<compile_context>
chip_gen: v5e
topology: v5e:2x2
jax: 0.10.0
libtpu: 0.0.40
codegen_flags: <defaults>
</compile_context>

<pallas_src>
import functools

import jax
import jax.numpy as jnp
from jax import lax
from jax.experimental import pallas as pl
from jax.experimental.pallas import tpu as pltpu


def _gmax_pool_kernel(x_ref, o_ref, acc_ref, *, n_steps, acc_sub, rem, neutral):
    # x_ref:   [GB, TN, KC]        lane-dense tile of folded node rows
    # o_ref:   [1, GB, KC]         per-graph-block folded max (lane-dense store)
    # acc_ref: [GB, acc_sub, KC]   vreg-shaped running max (input dtype)
    j = pl.program_id(1)

    @pl.when(j == 0)
    def _init():
        acc_ref[...] = jnp.full(acc_ref.shape, neutral, dtype=acc_ref.dtype)

    tile = x_ref[...]                                   # [GB, TN, KC]
    gb, tn, kc = tile.shape

    if rem is not None:
        # Last node step is partial: mask out-of-range rows in-kernel (VPU work hidden
        # under the DMA) instead of padding the input with -inf in HBM.
        valid = jnp.where(j == n_steps - 1, rem, tn)
        rows = lax.broadcasted_iota(jnp.int32, tile.shape, dimension=1)
        tile = jnp.where(rows < valid, tile, neutral)

    if acc_sub > 1:
        # Pure-VPU partial max: split TN into [TN//acc_sub, acc_sub] vreg rows and
        # reduce over the non-minor axis (elementwise vreg maxes, no XLU).
        part = jnp.max(tile.reshape(gb, tn // acc_sub, acc_sub, kc), axis=1)
    else:
        # Single-step / tiny-graph path: one small cross-sublane reduce total.
        part = jnp.max(tile, axis=1, keepdims=True)
    acc_ref[...] = jnp.maximum(acc_ref[...], part)

    @pl.when(j == n_steps - 1)
    def _finalize():
        # One cross-sublane (XLU) reduce, deferred to the very end.
        o_ref[0] = jnp.max(acc_ref[...], axis=1).astype(o_ref.dtype)


def _pick_channel_fold(N, C):
    """Return (Cp, fold): channels lane-padded to Cp, `fold` nodes packed per lane row."""
    if C % 128 == 0:
        return C, 1
    if C > 128:
        # TODO(synk): a partial trailing lane-vreg is usually cheaper than an HBM pad
        # copy to the next 128-multiple; revisit if such C shows up in practice.
        return C, 1
    Cp = 1
    while Cp < C:
        Cp *= 2                       # next power-of-two divisor of 128
    fold = 128 // Cp
    while fold > 1 and N % fold != 0:
        fold //= 2                    # keep the wrapper reshape copy-free
    if fold == 1:
        return C, 1                   # padding channels without folding buys nothing
    return Cp, fold


def gmax_pooling_pallas(h_bnc, *, max_rows=2048):
    """h_bnc: [B, N, C] node features; returns [B, C] per-graph max readout.

    Note: a graph whose rows are all the neutral element (-inf for floats) returns the
    neutral element, i.e. the max over an empty node set.
    """
    B, N, C = h_bnc.shape
    dtype = h_bnc.dtype
    itemsize = jnp.dtype(dtype).itemsize
    if jnp.issubdtype(dtype, jnp.floating):
        neutral = float("-inf")
    else:
        neutral = int(jnp.iinfo(dtype).min)

    # Fold nodes into the lane axis so streamed tiles use all 128 lanes.
    Cp, fold = _pick_channel_fold(N, C)
    if Cp != C:
        h_bnc = jnp.pad(h_bnc, ((0, 0), (0, 0), (0, Cp - C)), constant_values=neutral)
    kc = fold * Cp
    n_fold = N // fold
    x = h_bnc.reshape(B, n_fold, kc)          # contiguous -> copy-free reshape

    sub = {4: 8, 2: 16, 1: 32}[itemsize]      # native sublanes per vreg for this dtype

    # Tile/grid selection: per-buffer footprint capped near the HBM-BW knee so the
    # double-buffered input stays far below v5e's 16 MiB scoped-VMEM default.
    if n_fold >= max_rows:
        gb, tn = 1, max_rows
    else:
        # Small graphs: pack several whole graphs per grid step (large contiguous DMA).
        rows_padded = -(-n_fold // sub) * sub          # account for sublane padding
        d = min(B, max(1, max_rows // rows_padded))
        while d > 1 and B % d != 0:
            d -= 1
        gb = max(d, 1)
        tn = n_fold
    n_steps = -(-n_fold // tn)
    rem = None if n_fold % tn == 0 else n_fold - (n_steps - 1) * tn
    acc_sub = sub if tn % sub == 0 else 1

    kernel = functools.partial(
        _gmax_pool_kernel, n_steps=n_steps, acc_sub=acc_sub, rem=rem, neutral=neutral)

    block_bytes = gb * (-(-tn // sub) * sub) * kc * itemsize
    vmem_limit = int(min(16 << 20, max(8 << 20, 4 * block_bytes + (2 << 20))))

    out_folded = pl.pallas_call(
        kernel,
        out_shape=jax.ShapeDtypeStruct((B // gb, gb, kc), dtype),
        grid_spec=pltpu.PrefetchScalarGridSpec(
            num_scalar_prefetch=0,
            grid=(B // gb, n_steps),                       # graphs parallel, nodes reduced
            in_specs=[pl.BlockSpec((gb, tn, kc), lambda i, j: (i, j, 0))],
            out_specs=pl.BlockSpec((1, gb, kc), lambda i, j: (i, 0, 0)),
            scratch_shapes=[pltpu.VMEM((gb, acc_sub, kc), dtype)],
        ),
        compiler_params=pltpu.CompilerParams(
            dimension_semantics=("parallel", "arbitrary"),
            vmem_limit_bytes=vmem_limit,
        ),
        cost_estimate=pl.CostEstimate(
            flops=int(B * n_fold * kc),
            transcendentals=0,
            bytes_accessed=int(B * n_fold * kc * itemsize + B * kc * itemsize),
        ),
    )(x)

    # Undo the lane fold in the wrapper (a few elementwise maxes on [B, 128]).
    out = jnp.max(out_folded.reshape(B, fold, Cp), axis=1)
    return out[:, :C]


def gmax_pooling_forward(features, num_graphs, nodes_per_graph):
    """Mirrors GMaxPooling.forward.

    features: dict with key '0' of shape [num_nodes_total, C, 1] (degree-0 SE3 features).
    The batched graph G is represented by (num_graphs, nodes_per_graph), equal-size graphs.
    """
    h = features['0'][..., -1]                              # [num_nodes_total, C]
    C = h.shape[-1]
    h_bnc = h.reshape(num_graphs, nodes_per_graph, C)       # segment layout [B, N, C]
    return gmax_pooling_pallas(h_bnc)


if __name__ == "__main__":
    key = jax.random.PRNGKey(0)
    B, N, C = 2, 16, 32                                     # 2 graphs, 16 nodes, 32 channels
    feats0 = jax.random.normal(key, (B * N, C, 1), dtype=jnp.float32)
    features = {'0': feats0}

    out = gmax_pooling_forward(features, num_graphs=B, nodes_per_graph=N)
    out = jax.block_until_ready(out)

    # reference check (plain JAX)
    ref = jnp.max(feats0[..., -1].reshape(B, N, C), axis=1)
    assert out.shape == (B, C)
    assert jnp.allclose(out, ref), "mismatch vs reference"
    print("KERNEL_OK")
</pallas_src>

<mosaic_0001>
module attributes {stable_mosaic.version = 11 : i64} {
  func.func @_gmax_pool_kernel(%arg0: i32, %arg1: i32, %arg2: memref<2x4x128xf32, #tpu.memory_space<vmem>>, %arg3: memref<1x2x128xf32, #tpu.memory_space<vmem>>, %arg4: memref<2x1x128xf32, #tpu.memory_space<vmem>>) attributes {dimension_semantics = [#tpu.dimension_semantics<parallel>, #tpu.dimension_semantics<arbitrary>], iteration_bounds = array<i64: 1, 1>, scalar_prefetch = 0 : i64, scratch_operands = 1 : i64, tpu.core_type = #tpu.core_type<tc>, window_params = [{transform_indices = @transform_0, window_bounds = array<i64: 2, 4, 128>}, {transform_indices = @transform_1, window_bounds = array<i64: 1, 2, 128>}]} {
    %c0_i32 = arith.constant 0 : i32
    %0 = arith.cmpi eq, %arg1, %c0_i32 : i32
    %1 = arith.extui %0 : i1 to i32
    %c0_i32_0 = arith.constant 0 : i32
    %2 = arith.cmpi ne, %1, %c0_i32_0 : i32
    scf.if %2 {
      %cst_11 = arith.constant 0xFF800000 : f32
      %12 = vector.broadcast %cst_11 : f32 to vector<2x1x128xf32>
      %c0_12 = arith.constant 0 : index
      %c0_13 = arith.constant 0 : index
      %c0_14 = arith.constant 0 : index
      %13 = vector.load %arg4[%c0_12, %c0_13, %c0_14] : memref<2x1x128xf32, #tpu.memory_space<vmem>>, vector<2x1x128xf32>
      tpu.vector_store %arg4[%c0_12, %c0_13, %c0_14], %12 {strides = array<i32>} : memref<2x1x128xf32, #tpu.memory_space<vmem>>, vector<2x1x128xf32>,
    } else {
    }
    %c0 = arith.constant 0 : index
    %c0_1 = arith.constant 0 : index
    %c0_2 = arith.constant 0 : index
    %3 = vector.load %arg2[%c0, %c0_1, %c0_2] : memref<2x4x128xf32, #tpu.memory_space<vmem>>, vector<2x4x128xf32>
    %cst = arith.constant dense<0xFF800000> : vector<2x128xf32>
    %4 = vector.multi_reduction <maximumf>, %3, %cst [1] : vector<2x4x128xf32> to vector<2x128xf32>
    %5 = vector.shape_cast %4 : vector<2x128xf32> to vector<2x1x128xf32>
    %c0_3 = arith.constant 0 : index
    %c0_4 = arith.constant 0 : index
    %c0_5 = arith.constant 0 : index
    %6 = vector.load %arg4[%c0_3, %c0_4, %c0_5] : memref<2x1x128xf32, #tpu.memory_space<vmem>>, vector<2x1x128xf32>
    %7 = arith.maximumf %6, %5 : vector<2x1x128xf32>
    %c0_6 = arith.constant 0 : index
    %c0_7 = arith.constant 0 : index
    %c0_8 = arith.constant 0 : index
    %8 = vector.load %arg4[%c0_6, %c0_7, %c0_8] : memref<2x1x128xf32, #tpu.memory_space<vmem>>, vector<2x1x128xf32>
    tpu.vector_store %arg4[%c0_6, %c0_7, %c0_8], %7 {strides = array<i32>} : memref<2x1x128xf32, #tpu.memory_space<vmem>>, vector<2x1x128xf32>,
    %c0_i32_9 = arith.constant 0 : i32
    %9 = arith.cmpi eq, %arg1, %c0_i32_9 : i32
    %10 = arith.extui %9 : i1 to i32
    %c0_i32_10 = arith.constant 0 : i32
    %11 = arith.cmpi ne, %10, %c0_i32_10 : i32
    scf.if %11 {
      %c0_11 = arith.constant 0 : index
      %c0_12 = arith.constant 0 : index
      %c0_13 = arith.constant 0 : index
      %12 = vector.load %arg4[%c0_11, %c0_12, %c0_13] : memref<2x1x128xf32, #tpu.memory_space<vmem>>, vector<2x1x128xf32>
      %cst_14 = arith.constant dense<0xFF800000> : vector<2x128xf32>
      %13 = vector.multi_reduction <maximumf>, %12, %cst_14 [1] : vector<2x1x128xf32> to vector<2x128xf32>
      %c0_15 = arith.constant 0 : index
      %c0_16 = arith.constant 0 : index
      %c0_17 = arith.constant 0 : index
      %14 = vector.load %arg3[%c0_15, %c0_16, %c0_17] : memref<1x2x128xf32, #tpu.memory_space<vmem>>, vector<1x2x128xf32>
      %15 = vector.shape_cast %14 : vector<1x2x128xf32> to vector<2x128xf32>
      %16 = vector.shape_cast %13 : vector<2x128xf32> to vector<1x2x128xf32>
      tpu.vector_store %arg3[%c0_15, %c0_16, %c0_17], %16 {strides = array<i32>} : memref<1x2x128xf32, #tpu.memory_space<vmem>>, vector<1x2x128xf32>,
    } else {
    }
    return
  }
  func.func @transform_0(%arg0: i32, %arg1: i32) -> (i32, i32, i32) {
    %c0_i32 = arith.constant 0 : i32
    %c0_i32_0 = arith.constant 0 : i32
    return %arg0, %arg1, %c0_i32 : i32, i32, i32
  }
  func.func @transform_1(%arg0: i32, %arg1: i32) -> (i32, i32, i32) {
    %c0_i32 = arith.constant 0 : i32
    %c0_i32_0 = arith.constant 0 : i32
    %c0_i32_1 = arith.constant 0 : i32
    return %arg0, %c0_i32, %c0_i32_0 : i32, i32, i32
  }
}

</mosaic_0001>

<bundles_post_ra>
// kernel: tpu_custom_call.1
= control target key start
LH: loop header
LB: loop body
LE: loop exit
PB: predicated region body
PF: predicated region fallthrough
CT: control target
= control target key end

     0   :  { %6 = vsyncpa [#allocation4], 0  ;;  %s162_s0 = inlined_call_operand.hbm [shape: f32[2,4,128], index: 0, kind: input, shape index: {}]   ;;  %s163_s1 = inlined_call_operand.hbm [shape: f32[1,2,128], index: 1, kind: output, shape index: {}]  }
   0x1   :  { %7 = vsyncpa [#allocation5], 0  ;;  %s12_s8 = sshll.u32 %s162_s0, 4  ;;  %s141_s9 = smov [#allocation3]   ;;  %s13_s8 = int_to_ptr.hbm [resolvable:$true] %s12_s8 }
   0x2   :  { %s14_s10 = sshll.u32 %s141_s9, 4  ;;  %s142_s11 = smov 64   ;;  %s15_s10 = int_to_ptr.vmem [resolvable:$true] %s14_s10 }
   0x3   :  { %s143_s12 = smov 4  }
   0x4   :  { %20 = dma.hbm_to_vmem [thread:$0]  %s13_s8, 128, %s15_s10, [#allocation4], %s142_s11, %s142_s11, %s143_s12  }
   0x5   :  { %137 = dma.done.wait [#allocation4], 128  }
   0x6   :  { %138 = vsyncadd [#allocation4], 4294967168  ;;  %v144_v0 = vmov -inf   ;;  %vm33_vm0 = vcmask 1043456   ;;  %v31_v1 = vld [vmem:[#allocation3] sm:$0xf] }
   0x7   :  { %29 = vst [vmem:[#allocation2] sm:$0x1] %v144_v0  ;;  %v32_v2 = vld [vmem:[#allocation3 + $0x4] sm:$0xf]  ;;  %v34_v3 = vsel %vm33_vm0, %v31_v1, -inf  ;;  %s145_s0 = smov [#allocation6]  }
   0x8   :  { %30 = vst [vmem:[#allocation2 + $0x1] sm:$0x1] %v144_v0  ;;  %v41_v4 = vsel %vm33_vm0, %v32_v2, -inf  ;;  %v35_v5 = vrot.slane %v34_v3, 4  ;;  %s72_s13 = sshll.u32 %s145_s0, 4  ;;  %s74_s16 = sshll.u32 %s163_s1, 4  ;;  %s73_s13 = int_to_ptr.vmem [resolvable:$true] %s72_s13  ;;  %s75_s16 = int_to_ptr.hbm [resolvable:$true] %s74_s16 }
   0x9   :  { %v42_v6 = vrot.slane %v41_v4, 4 }
   0xa   :  { %v36_v7 = vmax.f32 %v34_v3, %v35_v5 }
   0xb   :  { %v43_v8 = vmax.f32 %v41_v4, %v42_v6 }
   0xc   :  { %v37_v9 = vrot.slane %v36_v7, 2 }
   0xd   :  { %v44_v10 = vrot.slane %v43_v8, 2 }
   0xe   :  { %v38_v11 = vmax.f32 %v36_v7, %v37_v9  ;;  %v48_v15 = vld [vmem:[#allocation2] sm:$0x1] }
   0xf   :  { %v45_v12 = vmax.f32 %v43_v8, %v44_v10  ;;  %v49_v16 = vld [vmem:[#allocation2 + $0x1] sm:$0x1] }
  0x10   :  { %v39_v13 = vrot.slane %v38_v11, 1 }
  0x11   :  { %v46_v14 = vrot.slane %v45_v12, 1 }
  0x12   :  { %v40_v17 = vmax.f32 %v38_v11, %v39_v13 }
  0x13   :  { %v47_v18 = vmax.f32 %v45_v12, %v46_v14 }
  0x14   :  { %v50_v19 = vmax.f32 %v48_v15, %v40_v17 }
  0x15   :  { %v51_v20 = vmax.f32 %v49_v16, %v47_v18 }
  0x16   :  { %52 = vst [vmem:[#allocation2] sm:$0x1] %v50_v19 }
  0x17   :  { %53 = vst [vmem:[#allocation2 + $0x1] sm:$0x1] %v51_v20 }
  0x1d   :  { %v57_v21 = vld [vmem:[#allocation2] sm:$0x1] }
  0x1e   :  { %61 = vst [vmem:[#allocation1] ss:$9 sm:$0xff] %v57_v21  ;;  %v58_v22 = vld [vmem:[#allocation2 + $0x1] sm:$0x1] }
  0x1f   :  { %63 = vst [vmem:[#allocation1 + $0x1] ss:$9 sm:$0xff] %v58_v22 }
  0x26   :  { %v64_v23 = vld [vmem:[#allocation1] sm:$0xff] }
  0x27   :  { %66 = vst [vmem:[#allocation6] sm:$0x3] %v64_v23 }
  0x28   :  { %77 = dma.vmem_to_hbm [thread:$0]  %s73_s13, 32, %s75_s16, [#allocation5]  }
  0x29   :  { %139 = dma.done.wait [#allocation5], 32  }
  0x2a   :  { %140 = vsyncadd [#allocation5], 4294967264 }
  0x2b   :  { %82 = vsyncpa [#allocation4], 1 }
  0x2c   :  { %83 = vsyncpa [#allocation5], 1 }

</bundles_post_ra>
